<compile_context>
chip_gen: v7x
topology: tpu7x:2x2x1
jax: 0.10.0
libtpu: 0.0.40
codegen_flags: <defaults>
</compile_context>

<pallas_src>
import math

import jax
import jax.numpy as jnp
from jax.experimental import pallas as pl
from jax.experimental.pallas import tpu as pltpu

_LANE = 128
_SUBLANE = 8
# Per-buffer tile budget (bytes). With double-buffered input + output roughly
# 4x of this is resident in VMEM: 4 * 2 MiB = 8 MiB (+ tiny scale/bias), safe
# on every generation (v5e 16 MiB scoped default, v6e 32/128, v7x 32/64 MiB).
_TILE_BYTES = 2 * 1024 * 1024


def _round_up(x, m):
    return (x + m - 1) // m * m


def _normalize_kernel(scale_ref, bias_ref, x_ref, o_ref):
    # scale_ref / bias_ref: (row_tile, 1) VMEM, broadcast across the lane axis.
    # x_ref / o_ref: (row_tile, col_tile) VMEM slab for the current block.
    o_ref[...] = x_ref[...] * scale_ref[...] + bias_ref[...]


def normalize_pallas(frames, mean, std, *, donate_input=False):
    """frames: (B, C, H, W) float32; mean/std: (C,) float32.

    Returns (frames - mean[None,:,None,None]) / std[None,:,None,None].
    """
    b, c, h, w = frames.shape
    rows = b * c
    hw = h * w

    mean = jnp.asarray(mean, frames.dtype)
    std = jnp.asarray(std, frames.dtype)
    inv_std = 1.0 / std

    # ---- sublane-padding elimination -------------------------------------
    # Fold a factor k of H*W into the row axis so the row count is a multiple
    # of 8 (a full vreg sublane group). Contiguous NCHW => pure metadata
    # reshape; row r of the folded view belongs to original row r // k.
    k = _SUBLANE // math.gcd(rows, _SUBLANE)
    if hw % k != 0:
        k = 1  # fall back: accept sublane padding rather than a copy
    rows_k = rows * k
    hw_k = hw // k

    # Per-row affine params in the folded view: y = x * scale + bias.
    scale = jnp.repeat(jnp.tile(inv_std, b), k).reshape(rows_k, 1)
    bias = jnp.repeat(jnp.tile(-mean * inv_std, b), k).reshape(rows_k, 1)

    # Lane-dense 2-D view of the frames.
    x2d = frames.reshape(rows_k, hw_k)

    elem_bytes = jnp.dtype(frames.dtype).itemsize

    # ---- row tiling (guard against large row counts) ----------------------
    max_rows = max(_SUBLANE,
                   (_TILE_BYTES // (_LANE * elem_bytes)) // _SUBLANE * _SUBLANE)
    row_tile = rows_k if rows_k <= max_rows else max_rows
    n_row = pl.cdiv(rows_k, row_tile)

    # ---- column tiling: large multiples of 128 within the budget ----------
    max_cols = max(_LANE,
                   (_TILE_BYTES // (row_tile * elem_bytes)) // _LANE * _LANE)
    if hw_k <= max_cols:
        col_tile = hw_k            # full dim => single column block
        n_col = 1
    elif hw_k % _LANE == 0:
        # Even, balanced block count so a 2-TC (v7x) split has no straggler.
        n_blocks = 2 * pl.cdiv(hw_k, 2 * max_cols)
        col_tile = min(max_cols, _round_up(pl.cdiv(hw_k, n_blocks), _LANE))
        n_col = pl.cdiv(hw_k, col_tile)
    else:
        col_tile = max_cols        # Pallas masks the partial last block
        n_col = pl.cdiv(hw_k, col_tile)

    # v7x: guarantee >=2 grid blocks when the problem is big enough so both
    # TensorCores (and their DMA engines) get work; neutral on v5e / v6e.
    if n_row * n_col == 1:
        if hw_k % _LANE == 0 and hw_k >= 2 * _LANE:
            col_tile = _round_up(pl.cdiv(hw_k, 2), _LANE)
            n_col = pl.cdiv(hw_k, col_tile)
        elif rows_k >= 2 * _SUBLANE:
            row_tile = _round_up(pl.cdiv(rows_k, 2), _SUBLANE)
            n_row = pl.cdiv(rows_k, row_tile)

    # ---- explicit VMEM limit from the real resident footprint -------------
    # 2x double-buffered (x + o) tiles + double-buffered lane-padded
    # scale/bias blocks, with 2x headroom; floor 16 MiB, cap 64 MiB (v7x phys).
    tile_bytes = row_tile * col_tile * elem_bytes
    aux_bytes = 2 * 2 * _round_up(row_tile, _SUBLANE) * _LANE * elem_bytes
    footprint = 4 * tile_bytes + aux_bytes
    vmem_limit = int(min(max(2 * footprint, 16 * 1024 * 1024),
                         64 * 1024 * 1024))

    cost = pl.CostEstimate(
        flops=2 * rows * hw,                       # one mul + one add / elem
        transcendentals=0,
        bytes_accessed=2 * rows * hw * elem_bytes + 2 * rows_k * elem_bytes,
    )

    out2d = pl.pallas_call(
        _normalize_kernel,
        out_shape=jax.ShapeDtypeStruct((rows_k, hw_k), frames.dtype),
        grid=(n_row, n_col),
        in_specs=[
            pl.BlockSpec((row_tile, 1), lambda i, j: (i, 0)),         # scale
            pl.BlockSpec((row_tile, 1), lambda i, j: (i, 0)),         # bias
            pl.BlockSpec((row_tile, col_tile), lambda i, j: (i, j)),  # x slab
        ],
        out_specs=pl.BlockSpec((row_tile, col_tile), lambda i, j: (i, j)),
        compiler_params=pltpu.CompilerParams(
            dimension_semantics=("parallel", "parallel"),
            vmem_limit_bytes=vmem_limit,
        ),
        cost_estimate=cost,
        input_output_aliases=({2: 0} if donate_input else {}),
    )(scale, bias, x2d)

    return out2d.reshape(b, c, h, w)


if __name__ == "__main__":
    key = jax.random.PRNGKey(0)

    # Deterministic "parameters" matching nn.Parameter(FloatTensor(mean/std)).
    mean = jnp.array([0.485, 0.456, 0.406], dtype=jnp.float32)
    std = jnp.array([0.229, 0.224, 0.225], dtype=jnp.float32)

    # Small shapes consistent with the module (3 RGB channels), exercising the
    # single-block, row-split and column-split code paths.
    test_shapes = [
        (2, 3, 16, 16),   # tiny: row-split path (>=2 blocks for v7x)
        (2, 3, 20, 20),   # hw not a multiple of 128, partial row block
        (2, 3, 64, 64),   # column-split path
    ]

    for i, (B, C, H, W) in enumerate(test_shapes):
        key, sub = jax.random.split(key)
        frames = jax.random.normal(sub, (B, C, H, W), dtype=jnp.float32)

        out = normalize_pallas(frames, mean, std)
        out = jax.block_until_ready(out)

        # Reference check (plain JAX, same broadcast semantics as PyTorch).
        ref = (frames - mean.reshape(1, C, 1, 1)) / std.reshape(1, C, 1, 1)
        assert jnp.allclose(out, ref, atol=1e-5, rtol=1e-5), \
            f"mismatch vs reference for shape {(B, C, H, W)}"

    print("KERNEL_OK")
</pallas_src>

<mosaic_0001>
module attributes {stable_mosaic.version = 11 : i64} {
  func.func @_normalize_kernel(%arg0: i32, %arg1: i32, %arg2: memref<16x1xf32, #tpu.memory_space<vmem>>, %arg3: memref<16x1xf32, #tpu.memory_space<vmem>>, %arg4: memref<16x64xf32, #tpu.memory_space<vmem>>, %arg5: memref<16x64xf32, #tpu.memory_space<vmem>>) attributes {dimension_semantics = [#tpu.dimension_semantics<parallel>, #tpu.dimension_semantics<parallel>], iteration_bounds = array<i64: 2, 1>, scalar_prefetch = 0 : i64, scratch_operands = 0 : i64, tpu.core_type = #tpu.core_type<tc>, window_params = [{transform_indices = @transform_0, window_bounds = array<i64: 16, 1>}, {transform_indices = @transform_1, window_bounds = array<i64: 16, 1>}, {transform_indices = @transform_2, window_bounds = array<i64: 16, 64>}, {transform_indices = @transform_3, window_bounds = array<i64: 16, 64>}]} {
    %c0 = arith.constant 0 : index
    %c0_0 = arith.constant 0 : index
    %0 = vector.load %arg4[%c0, %c0_0] : memref<16x64xf32, #tpu.memory_space<vmem>>, vector<16x64xf32>
    %c0_1 = arith.constant 0 : index
    %c0_2 = arith.constant 0 : index
    %1 = vector.load %arg2[%c0_1, %c0_2] : memref<16x1xf32, #tpu.memory_space<vmem>>, vector<16x1xf32>
    %2 = vector.broadcast %1 : vector<16x1xf32> to vector<16x64xf32>
    %3 = arith.mulf %0, %2 : vector<16x64xf32>
    %c0_3 = arith.constant 0 : index
    %c0_4 = arith.constant 0 : index
    %4 = vector.load %arg3[%c0_3, %c0_4] : memref<16x1xf32, #tpu.memory_space<vmem>>, vector<16x1xf32>
    %5 = vector.broadcast %4 : vector<16x1xf32> to vector<16x64xf32>
    %6 = arith.addf %3, %5 : vector<16x64xf32>
    %c0_5 = arith.constant 0 : index
    %c0_6 = arith.constant 0 : index
    %7 = vector.load %arg5[%c0_5, %c0_6] : memref<16x64xf32, #tpu.memory_space<vmem>>, vector<16x64xf32>
    tpu.vector_store %arg5[%c0_5, %c0_6], %6 {strides = array<i32>} : memref<16x64xf32, #tpu.memory_space<vmem>>, vector<16x64xf32>,
    return
  }
  func.func @transform_0(%arg0: i32, %arg1: i32) -> (i32, i32) {
    %c0_i32 = arith.constant 0 : i32
    %c0_i32_0 = arith.constant 0 : i32
    return %arg0, %c0_i32 : i32, i32
  }
  func.func @transform_1(%arg0: i32, %arg1: i32) -> (i32, i32) {
    %c0_i32 = arith.constant 0 : i32
    %c0_i32_0 = arith.constant 0 : i32
    return %arg0, %c0_i32 : i32, i32
  }
  func.func @transform_2(%arg0: i32, %arg1: i32) -> (i32, i32) {
    %c0_i32 = arith.constant 0 : i32
    return %arg0, %arg1 : i32, i32
  }
  func.func @transform_3(%arg0: i32, %arg1: i32) -> (i32, i32) {
    %c0_i32 = arith.constant 0 : i32
    return %arg0, %arg1 : i32, i32
  }
}

</mosaic_0001>

<bundles_post_ra>
// kernel: tpu_custom_call.1
= control target key start
LH: loop header
LB: loop body
LE: loop exit
PB: predicated region body
PF: predicated region fallthrough
CT: control target
= control target key end

     0   :  { %8 = vsyncpa [#allocation3], 0  ;;  %s778_s0 = inlined_call_operand.vmem [shape: f32[24,1], index: 0, kind: input, shape index: {}]   ;;  %s779_s1 = inlined_call_operand.vmem [shape: f32[24,1], index: 1, kind: input, shape index: {}]   ;;  %s780_s2 = inlined_call_operand.vmem [shape: f32[24,64], index: 2, kind: input, shape index: {}]   ;;  %s781_s3 = inlined_call_operand.hbm [shape: f32[24,64], index: 3, kind: output, shape index: {}]  }
   0x1   :  { %10 = vsyncpa [#allocation3 + $0x1], 0  ;;  %s643_s12 = smov 0   ;;  %s645_s13 = smov 0  }
   0x2   :  { %s647_s14 = smov 0   ;;  %s649_s15 = smov 0  }
   0x3   :  { %s651_s16 = smov 0   ;;  %s653_s17 = smov 0  }
   0x4 LB: > { %s458_s18 = sadd.s32 4294967295, %s617_s17   ;;  %s459_s19 = sadd.s32 4294967294, %s617_s17   ;;  %s617_s17 = sphi %s653_s17, %s16_s17   ;;  %s613_s16 = sphi %s651_s16, %s788_s16   ;;  %s609_s15 = sphi %s649_s15, %s787_s15   ;;  %s605_s14 = sphi %s647_s14, %s786_s14   ;;  %s601_s13 = sphi %s645_s13, %s785_s13   ;;  %s597_s12 = sphi %s643_s12, %s784_s12  }
   0x5   : > { %s28_s20 = sadd.s32 1, %s613_s16  ;;  %s117_s21 = sadd.s32 1, %s605_s14 }
   0x6   : > { %p30_p0 = scmp.ge.s32.totalorder %s28_s20, 2  ;;  %p127_p1 = scmp.ne.s32.totalorder %s605_s14, %s601_s13 }
   0x7   : > { %p128_p2 = scmp.eq.s32.totalorder %s458_s18, 1  ;;  %p133_p3 = scmp.ne.s32.totalorder %s601_s13, %s597_s12 }
   0x8   : > { %s790_s20 = smov (%p30_p0, %s28_s20), 0  ;;  %p134_p5 = scmp.eq.s32.totalorder %s459_s19, 1 }
   0x9   : > { %p683_p4 = por %p128_p2, %p127_p1  ;;  %s112_s23 = ssub.s32 %s613_s16, %s790_s20 }
   0xa   : > { %p462_p6 = scmp.ge.s32.totalorder %s617_s17, 1  ;;  %p115_p7 = scmp.eq.s32.totalorder %s112_s23, 0 }
   0xb   : > { %p690_p8 = por %p134_p5, %p133_p3  ;;  %p206_p9 = scmp.lt.s32.totalorder %s617_s17, 3 }
   0xc   : > { %s696_s25 = scalar_select %p115_p7, %s605_s14, %s117_s21  }
   0xd   : > { %p207_p10 = pnand %p462_p6, %p206_p9 }
   0xe   : > { %s699_s26 = sshll.u32 (!%p207_p10), %s609_s15, 1  ;;  %v619_v0 = vmov (!%p207_p10), 0   ;;  %s252_s8 = sand.u32 (!%p207_p10), 1, %s601_s13   ;;  %vm335_vm0 = vcmask (!%p207_p10), 523264  }
   0xf   : > { %210 = sbr.rel (%p207_p10) target bundleno = 193 (0xc1), region = 32  ;;  %538 = vset.pattern.permute.xlu1 (!%p207_p10), %v619_v0  ;;  %537 = vset.pattern.permute.xlu0 (!%p207_p10), %v619_v0  ;;  %p260_p11 = scmp.lt.s32.totalorder (!%p207_p10), %s699_s26, 2 }
  0x10   : > { %s463_s18 = sshll.u32 (!%p207_p10), %s252_s8, 4  ;;  %s713_s21 = scalar_lea.sflag (!%p207_p10), [#allocation3], %s252_s8 }
  0x11   : > { %s254_s19 = scalar_lea.vmem (!%p207_p10), [#allocation2], %s463_s18 }
  0x16   : > { %s261_s27 = scalar_select %p260_p11, %s699_s26, 2 }
  0x17   : > { %s347_s23 = ssub.s32 (%p683_p4), 3, %s699_s26 }
  0x18   : > { %s465_s28 = sshll.u32 %s261_s27, 3  ;;  %p348_p12 = scmp.lt.s32.totalorder (%p683_p4), %s347_s23, 2 }
  0x19   : > { %s277_s4 = scalar_lea.vmem %s779_s1, %s465_s28  ;;  %s263_s7 = scalar_lea.vmem %s778_s0, %s465_s28 }
  0x1a   : > { %v321_v1 = vld [vmem:[%s277_s4] sm:$0xff]  ;;  %v322_v3 = vld [vmem:[%s277_s4 + $0x8] sm:$0xff]  ;;  %s294_s11 = scalar_lea.vmem %s780_s2, %s465_s28 }
  0x1b   : > { %v307_v2 = vld [vmem:[%s263_s7] sm:$0xff]  ;;  %325 = vperm.xlu1 %538, %v321_v1   ;;  %v308_v4 = vld [vmem:[%s263_s7 + $0x8] sm:$0xff] }
  0x1c   : > { %311 = vperm.xlu0 %537, %v307_v2   ;;  %v305_v5 = vld [vmem:[%s294_s11] sm:$0xff]  ;;  %v306_v9 = vld [vmem:[%s294_s11 + $0x8] sm:$0xff] }
  0x1f   : > { %330 = vperm.xlu1 %538, %v322_v3  }
  0x20   : > { %316 = vperm.xlu0 %537, %v308_v4  }
  0x9a   : > { %v326_v6 = vpop.permute.xlu1 %325 }
  0x9b   : > { %v312_v7 = vpop.permute.xlu0 %311 }
  0x9c   : > { %v319_v8 = vmul.f32 %v312_v7, %v305_v5 }
  0x9e   : > { %v333_v10 = vadd.f32 %v326_v6, %v319_v8  ;;  %v331_v13 = vpop.permute.xlu1 %330  ;;  %345 = sbr.rel (!%p683_p4) target bundleno = 193 (0xc1), region = 36 }
  0x9f   : > { %v317_v11 = vpop.permute.xlu0 %316 }
  0xa0   : > { %336 = vst.msk [vmem:[%s254_s19] sm:$0xff] %vm335_vm0, %v333_v10  ;;  %v320_v12 = vmul.f32 %v317_v11, %v306_v9 }
  0xa2   : > { %v334_v14 = vadd.f32 %v331_v13, %v320_v12 }
  0xa4   : > { %337 = vst.msk [vmem:[%s254_s19 + $0x8] sm:$0xff] %vm335_vm0, %v334_v14 }
  0xa5   : > { %s792_s23 = smov (!%p348_p12, %s347_s23), 2 }
  0xa6   : > { %s718_s27 = sshll.u32 %s792_s23, 7 }
  0xa7   : > { %s352_s28 = ssub.s32 256, %s718_s27 }
  0xa8   : > { %353 = vsyncadd %s713_s21, %s352_s28  ;;  %p473_p13 = scmp.ne.s32.totalorder %s718_s27, 0  ;;  %s479_s29 = sshll.u32 %s609_s15, 8 }
  0xa9   : > { %s727_s22 = scalar_lea.hbm %s781_s3, %s479_s29  ;;  %s359_s5 = sshll.u32 %s254_s19, 4  ;;  %s729_s5 = int_to_ptr.vmem [resolvable:$true] %s359_s5 }
  0xaa   : > { %s539_s26 = scalar_lea.vmem %s729_s5, %s718_s27  ;;  %s620_s6 = smov [#allocation2]  }
  0xab   : > { %p540_p0 = scmp.ne.s32.totalorder %s729_s5, %s539_s26  ;;  %s543_s7 = sshll.u32 %s620_s6, 4  ;;  %s544_s7 = int_to_ptr.vmem [resolvable:$false] %s543_s7 }
  0xac   : > { %s545_s15 = scalar_lea.vmem %s544_s7, 512  ;;  %p546_p3 = scmp.lt.s32.totalorder %s729_s5, %s544_s7 }
  0xad   : > { %p541_p1 = pnand %p540_p0, %p473_p13  ;;  %p547_p4 = scmp.lt.s32.totalorder %s545_s15, %s539_s26 }
  0xaf   : > { %p542_p2 = pneg %p541_p1  ;;  %p548_p5 = por %p547_p4, %p546_p3 }
  0xb1   : > { %p549_p6 = pnand %p548_p5, %p542_p2 }
  0xb3   : > { %552 = shalt.err (!%p549_p6)
}
  0xb4   : > { %s553_s8 = scalar_lea.hbm %s727_s22, %s718_s27  ;;  %s557_s11 = scalar_lea.hbm %s781_s3, 384 }
  0xb5   : > { %p554_p7 = scmp.ne.s32.totalorder %s727_s22, %s553_s8  ;;  %p558_p11 = scmp.lt.u32.totalorder %s727_s22, %s781_s3 }
  0xb6   : > { %p559_p12 = scmp.lt.u32.totalorder %s557_s11, %s553_s8  ;;  %p561_p1 = scmp.lt.u32.totalorder %s553_s8, %s727_s22 }
  0xb7   : > { %p555_p9 = pnand %p554_p7, %p473_p13 }
  0xb8   : > { %p560_p0 = por %p559_p12, %p558_p11 }
  0xb9   : > { %p556_p10 = pneg %p555_p9 }
  0xba   : > { %p562_p2 = por %p561_p1, %p560_p0 }
  0xbc   : > { %p563_p3 = pnand %p562_p2, %p556_p10 }
  0xbe   : > { %566 = shalt.err (!%p563_p3)
}
  0xbf   : > { %s621_s23 = smov 128   ;;  %s622_s28 = smov 8  }
  0xc0   : > { %365 = dma.vmem_to_hbm [thread:$0]  (%p473_p13), %s729_s5, %s718_s27, %s727_s22, %s713_s21, %s621_s23, %s621_s23, %s622_s28  }
  0xc1 PF: > { %p485_p4 = scmp.ge.s32.totalorder %s617_s17, 2  ;;  %s374_s29 = sand.u32 1, %s597_s12  }
  0xc2   : > { %s375_s30 = scalar_lea.sflag [#allocation3], %s374_s29 }
  0xc3   : > { %p482_p5 = pnand %p485_p4, %p690_p8 }
  0xc5   : > { %592 = dma.done.wait (!%p482_p5), %s375_s30, 256  }
  0xc6   : > { %594 = vsyncadd (!%p482_p5), %s375_s30, 4294967040  ;;  %s16_s17 = sadd.s32 1, %s617_s17   ;;  %s784_s12 = smov %s601_s13 }
  0xc7   : > { %p13_p6 = scmp.ge.s32.totalorder %s16_s17, 4   ;;  %s785_s13 = smov %s605_s14 }
  0xc8   : > { %s786_s14 = smov %s696_s25  ;;  %s787_s15 = smov %s613_s16 }
  0xc9   : > { %s788_s16 = smov %s790_s20  ;;  %15 = sbr.rel (!%p13_p6) target bundleno = 4 (0x4), region = 73 }
  0xd0   :  { %380 = vsyncpa [#allocation3], 1 }
  0xd1   :  { %382 = vsyncpa [#allocation3 + $0x1], 1 }

</bundles_post_ra>
